<compile_context>
chip_gen: v5e
topology: v5e:2x2
jax: 0.10.0
libtpu: 0.0.40
codegen_flags: <defaults>
</compile_context>

<pallas_src>
from functools import partial

import numpy as np
import jax
import jax.numpy as jnp
from jax.experimental import pallas as pl
from jax.experimental.pallas import tpu as pltpu

DIM = 2            # prior dimensionality (2-D standard Gaussian)
D = DIM + 1        # flow feature width (2 coords + 1 time column)
K = 4              # number of coupling flows
H = 32             # hidden width of the coupling conditioner MLP
LOG2PI = float(np.log(2.0 * np.pi))


# ----------------------------------------------------------------------------
# Kernel
# ----------------------------------------------------------------------------
def _nf_forward_kernel(xt_ref, wb1_ref, wsb_ref, wtb_ref, out_ref, *,
                       chunk, n_chunks, use_bf16):
    # xt_ref : (D, TM)        batch on lanes, features on sublanes
    # wb1_ref: (K, H, 8)      cols 0..D-1 = (W1*mask)^T, col D = b1, rest 0
    # wsb_ref: (K, 8, H+1)    rows 0..D-1 = (1-mask)-folded Ws^T, rows D..7 = 0,
    #                         last column = (1-mask)-folded bias
    # wtb_ref: (K, 8, H+1)    same layout for the shift head
    # out_ref: (8, TM)        rows 0..D-1 = z, D = prior_logprob, D+1 = log_det,
    #                         D+2 = px, rest zero
    wdt = jnp.bfloat16 if use_bf16 else jnp.float32

    # Hoisted vector constants (don't rebuild broadcasts inside the loop).
    ones_row = jnp.ones((1, chunk), jnp.float32)
    pad_rows = jnp.zeros((8 - D - 1, chunk), jnp.float32)
    out_pad = jnp.zeros((8 - D - 3, chunk), jnp.float32)

    # Static unroll over independent lane chunks (compute tile decoupled from
    # the DMA tile; each chunk ends with its own dense store, so no live state
    # crosses chunk boundaries).
    for c in range(n_chunks):
        lo = c * chunk
        x = xt_ref[:, lo:lo + chunk].astype(jnp.float32)          # (D, chunk)
        # Feature slab: rows 0..D-1 = x, row D = 1 (bias fold), rows D+1..7 = 0.
        x8 = jnp.concatenate([x, ones_row, pad_rows], axis=0)      # (8, chunk)
        log_det = jnp.zeros((1, chunk), jnp.float32)

        # Static unroll over flows; weights for flow k stacked on axis 0.
        for k in range(K):
            w1 = wb1_ref[k]                                        # (H, 8)
            wsb = wsb_ref[k]                                       # (8, H+1)
            wtb = wtb_ref[k]                                       # (8, H+1)

            # First conditioner layer on the MXU (contraction padded to 8;
            # mask + bias folded into the weight columns).
            h_pre = jnp.dot(w1, x8, preferred_element_type=jnp.float32)
            h = jnp.tanh(h_pre.astype(wdt))                        # (H, chunk)

            # Scale / shift heads: rows D..7 of the weights/bias are zero, so
            # s/t are exactly 0 on the padding rows and the coupling update
            # can run on the full 8-row slab (exp(0)=1, +0).
            s = jnp.tanh(
                jnp.dot(wsb[:, :H].astype(wdt), h,
                        preferred_element_type=jnp.float32)
                + wsb[:, H:H + 1])                                 # (8, chunk)
            t = (jnp.dot(wtb[:, :H].astype(wdt), h,
                         preferred_element_type=jnp.float32)
                 + wtb[:, H:H + 1])                                # (8, chunk)

            x8 = x8 * jnp.exp(s) + t
            log_det = log_det + jnp.sum(s, axis=0, keepdims=True)  # (1, chunk)

        # prior.log_prob(x[:, :DIM]) for a standard 2-D Gaussian.
        sq = x8[0:1, :] * x8[0:1, :] + x8[1:2, :] * x8[1:2, :]
        prior_logprob = -0.5 * sq - 0.5 * DIM * LOG2PI              # (1, chunk)
        px = jnp.exp(prior_logprob + log_det)                       # (1, chunk)

        out_ref[:, lo:lo + chunk] = jnp.concatenate(
            [x8[0:D, :], prior_logprob, log_det, px, out_pad], axis=0)


# ----------------------------------------------------------------------------
# Host-side parameter packing (hoist per parameter set; mask folded into W/b)
# ----------------------------------------------------------------------------
def pack_params(masks, w1, b1, ws, bs, wt, bt):
    mask = masks[:, 0, :].astype(jnp.float32)                       # (K, D)
    inv = 1.0 - mask

    # First layer: (K, H, 8) = [mask-folded W1^T | b1 | 0-padding to 8].
    w1mT = jnp.swapaxes(w1 * mask[:, :, None], 1, 2)                # (K, H, D)
    b1T = jnp.swapaxes(b1, 1, 2)                                    # (K, H, 1)
    pad1 = jnp.zeros((K, H, 8 - D - 1), jnp.float32)
    wb1 = jnp.concatenate([w1mT, b1T, pad1], axis=2)                # (K, H, 8)

    # Heads: (K, 8, H+1) with (1-mask)-folded rows 0..D-1, zero rows D..7.
    def head(w, b):
        wT = jnp.swapaxes(w, 1, 2) * inv[:, :, None]                # (K, D, H)
        bT = jnp.swapaxes(b, 1, 2) * inv[:, :, None]                # (K, D, 1)
        pw = jnp.zeros((K, 8 - D, H), jnp.float32)
        pb = jnp.zeros((K, 8 - D, 1), jnp.float32)
        return jnp.concatenate(
            [jnp.concatenate([wT, pw], axis=1),
             jnp.concatenate([bT, pb], axis=1)], axis=2)            # (K, 8, H+1)

    return wb1, head(ws, bs), head(wt, bt)


# ----------------------------------------------------------------------------
# Tiling
# ----------------------------------------------------------------------------
def _pick_tm(m, block_target=4096):
    """Largest batch tile <= block_target; prefer an even grid-step count
    (v7x: 2 TensorCores) as long as the tile stays >= 256 lanes."""
    cands = [t for t in range(128, min(m, block_target) + 1, 128) if m % t == 0]
    assert cands, "batch size must be a multiple of 128"
    even = [t for t in cands if (m // t) % 2 == 0 and t >= 256]
    pool = even if even else cands
    return max(pool)


# ----------------------------------------------------------------------------
# Wrappers
# ----------------------------------------------------------------------------
@partial(jax.jit, static_argnames=("tm", "chunk", "use_bf16"))
def _nf_forward_slab(xt, wb1, wsb, wtb, *, tm, chunk, use_bf16):
    _, m = xt.shape
    n_chunks = tm // chunk
    kernel = partial(_nf_forward_kernel, chunk=chunk, n_chunks=n_chunks,
                     use_bf16=use_bf16)
    return pl.pallas_call(
        kernel,
        out_shape=jax.ShapeDtypeStruct((8, m), jnp.float32),
        grid_spec=pltpu.PrefetchScalarGridSpec(
            num_scalar_prefetch=0,
            grid=(m // tm,),
            in_specs=[
                pl.BlockSpec((D, tm), lambda i: (0, i)),            # x^T tile
                pl.BlockSpec((K, H, 8), lambda i: (0, 0, 0)),       # [W1^T|b1]
                pl.BlockSpec((K, 8, H + 1), lambda i: (0, 0, 0)),   # scale head
                pl.BlockSpec((K, 8, H + 1), lambda i: (0, 0, 0)),   # shift head
            ],
            out_specs=pl.BlockSpec((8, tm), lambda i: (0, i)),      # packed out
        ),
        compiler_params=pltpu.CompilerParams(
            dimension_semantics=("parallel",)),
    )(xt, wb1, wsb, wtb)


def nf_forward_packed(xt, packed, *, tm=None, chunk=512, use_bf16=False):
    """Transposed-layout entry point: xt is (D, m); returns the (8, m) slab
    (rows 0..D-1 = z, D = prior_logprob, D+1 = log_det, D+2 = px).
    Use with a pre-computed `pack_params(...)` to skip wrapper transposes."""
    d, m = xt.shape
    assert d == D and m % 128 == 0, "batch must be a multiple of 128"
    if tm is None:
        tm = _pick_tm(m)
    assert tm % 128 == 0 and m % tm == 0
    chunk = min(chunk, tm)
    assert tm % chunk == 0 and chunk % 128 == 0
    return _nf_forward_slab(xt, *packed, tm=tm, chunk=chunk, use_bf16=use_bf16)


@partial(jax.jit, static_argnames=("tm", "chunk", "use_bf16"))
def nf_forward(x, masks, w1, b1, ws, bs, wt, bt, *,
               tm=None, chunk=512, use_bf16=False):
    """NormalizingFlowModel.forward: returns (z, prior_logprob, log_det, px)."""
    packed = pack_params(masks, w1, b1, ws, bs, wt, bt)
    xt = x.astype(jnp.float32).T                                    # (D, m)
    out = nf_forward_packed(xt, packed, tm=tm, chunk=chunk, use_bf16=use_bf16)
    z = out[:D, :].T                                                # (m, D)
    return z, out[D], out[D + 1], out[D + 2]


# ----------------------------------------------------------------------------
# Pure-JAX reference (mirrors the PyTorch forward semantics)
# ----------------------------------------------------------------------------
def nf_forward_ref(x, masks, w1, b1, ws, bs, wt, bt):
    m = x.shape[0]
    log_det = jnp.zeros((m,), jnp.float32)
    for k in range(K):
        mask = masks[k]                                             # (1, D)
        h = jnp.tanh((x * mask) @ w1[k] + b1[k])
        s = jnp.tanh(h @ ws[k] + bs[k]) * (1.0 - mask)
        t = (h @ wt[k] + bt[k]) * (1.0 - mask)
        x = x * jnp.exp(s) + t
        log_det = log_det + jnp.sum(s, axis=1)
    prior_logprob = -0.5 * jnp.sum(x[:, :DIM] ** 2, axis=1) - 0.5 * DIM * LOG2PI
    px = jnp.exp(prior_logprob + log_det)
    return x, prior_logprob, log_det, px


def make_params(key):
    ks = jax.random.split(key, 6)
    masks = np.zeros((K, 1, D), np.float32)
    for k in range(K):
        for j in range(D):
            masks[k, 0, j] = 1.0 if (j % 2) == (k % 2) else 0.0
    masks = jnp.asarray(masks)
    w1 = 0.1 * jax.random.normal(ks[0], (K, D, H), jnp.float32)
    b1 = 0.1 * jax.random.normal(ks[1], (K, 1, H), jnp.float32)
    ws = 0.1 * jax.random.normal(ks[2], (K, H, D), jnp.float32)
    bs = 0.1 * jax.random.normal(ks[3], (K, 1, D), jnp.float32)
    wt = 0.1 * jax.random.normal(ks[4], (K, H, D), jnp.float32)
    bt = 0.1 * jax.random.normal(ks[5], (K, 1, D), jnp.float32)
    return masks, w1, b1, ws, bs, wt, bt


if __name__ == "__main__":
    key = jax.random.PRNGKey(0)
    kx, kp = jax.random.split(key)
    params = make_params(kp)

    def make_x(k, m):
        coords = jax.random.normal(k, (m, DIM), jnp.float32)
        time = jnp.ones((m, 1), jnp.float32) * 0.5
        return jnp.concatenate([coords, time], axis=1)              # (m, D)

    def check(outs, refs, rtol, atol):
        for a, b in zip(outs, refs):
            assert np.allclose(np.asarray(a), np.asarray(b), rtol=rtol, atol=atol)

    # Small batch: single grid step, single in-kernel lane chunk.
    x_small = make_x(kx, 256)
    outs = jax.block_until_ready(nf_forward(x_small, *params))
    check(outs, nf_forward_ref(x_small, *params), 1e-4, 1e-4)

    # Larger batch: even grid (2 steps of 1024 lanes), 2 lane chunks per step.
    x_big = make_x(kx, 2048)
    refs_big = nf_forward_ref(x_big, *params)
    outs = jax.block_until_ready(nf_forward(x_big, *params))
    check(outs, refs_big, 1e-4, 1e-4)

    # bf16 transcendental / bf16 head-dot path (v6e / v7x); skip on older gens
    # whose VPU/EUP have no bf16 fast path.
    kind = jax.devices()[0].device_kind.lower()
    if not any(g in kind for g in ("v2", "v3", "v4", "v5")):
        outs = jax.block_until_ready(nf_forward(x_big, *params, use_bf16=True))
        check(outs, refs_big, 3e-2, 3e-2)

    print("KERNEL_OK")
</pallas_src>

<mosaic_0001>
module attributes {stable_mosaic.version = 11 : i64} {
  func.func @_nf_forward_kernel(%arg0: i32, %arg1: memref<3x256xf32, #tpu.memory_space<vmem>>, %arg2: memref<4x32x8xf32, #tpu.memory_space<vmem>>, %arg3: memref<4x8x33xf32, #tpu.memory_space<vmem>>, %arg4: memref<4x8x33xf32, #tpu.memory_space<vmem>>, %arg5: memref<8x256xf32, #tpu.memory_space<vmem>>) attributes {dimension_semantics = [#tpu.dimension_semantics<parallel>], iteration_bounds = array<i64: 1>, scalar_prefetch = 0 : i64, scratch_operands = 0 : i64, tpu.core_type = #tpu.core_type<tc>, window_params = [{transform_indices = @transform_0, window_bounds = array<i64: 3, 256>}, {pipeline_mode = #tpu.pipeline_mode<synchronous>, transform_indices = @transform_1, window_bounds = array<i64: 4, 32, 8>}, {pipeline_mode = #tpu.pipeline_mode<synchronous>, transform_indices = @transform_2, window_bounds = array<i64: 4, 8, 33>}, {pipeline_mode = #tpu.pipeline_mode<synchronous>, transform_indices = @transform_3, window_bounds = array<i64: 4, 8, 33>}, {transform_indices = @transform_4, window_bounds = array<i64: 8, 256>}]} {
    %cst = arith.constant 1.000000e+00 : f32
    %0 = vector.broadcast %cst : f32 to vector<1x256xf32>
    %cst_0 = arith.constant 0.000000e+00 : f32
    %1 = vector.broadcast %cst_0 : f32 to vector<4x256xf32>
    %cst_1 = arith.constant 0.000000e+00 : f32
    %2 = vector.broadcast %cst_1 : f32 to vector<2x256xf32>
    %c0 = arith.constant 0 : index
    %c0_2 = arith.constant 0 : index
    %3 = vector.load %arg1[%c0, %c0_2] : memref<3x256xf32, #tpu.memory_space<vmem>>, vector<3x256xf32>
    %4 = tpu.concatenate %3, %0, %1 in 0 : vector<3x256xf32>, vector<1x256xf32>, vector<4x256xf32> -> vector<8x256xf32>
    %cst_3 = arith.constant 0.000000e+00 : f32
    %5 = vector.broadcast %cst_3 : f32 to vector<1x256xf32>
    %c0_4 = arith.constant 0 : index
    %c0_5 = arith.constant 0 : index
    %c0_6 = arith.constant 0 : index
    %6 = vector.load %arg2[%c0_4, %c0_5, %c0_6] : memref<4x32x8xf32, #tpu.memory_space<vmem>>, vector<1x32x8xf32>
    %7 = vector.shape_cast %6 : vector<1x32x8xf32> to vector<32x8xf32>
    %c0_7 = arith.constant 0 : index
    %c0_8 = arith.constant 0 : index
    %c0_9 = arith.constant 0 : index
    %8 = vector.load %arg3[%c0_7, %c0_8, %c0_9] : memref<4x8x33xf32, #tpu.memory_space<vmem>>, vector<1x8x33xf32>
    %9 = vector.shape_cast %8 : vector<1x8x33xf32> to vector<8x33xf32>
    %c0_10 = arith.constant 0 : index
    %c0_11 = arith.constant 0 : index
    %c0_12 = arith.constant 0 : index
    %10 = vector.load %arg4[%c0_10, %c0_11, %c0_12] : memref<4x8x33xf32, #tpu.memory_space<vmem>>, vector<1x8x33xf32>
    %11 = vector.shape_cast %10 : vector<1x8x33xf32> to vector<8x33xf32>
    %cst_13 = arith.constant dense<0.000000e+00> : vector<32x256xf32>
    %12 = tpu.matmul %7, %4, %cst_13 {dimension_numbers = #tpu.dot_dimension_numbers<[1], [0], [0], [1], [0, 0, 1, 1], [], []>} : vector<32x8xf32>, vector<8x256xf32>, vector<32x256xf32> -> vector<32x256xf32>
    %13 = math.tanh %12 : vector<32x256xf32>
    %14 = vector.extract_strided_slice %9 {offsets = [0, 0], sizes = [8, 32], strides = [1, 1]} : vector<8x33xf32> to vector<8x32xf32>
    %cst_14 = arith.constant dense<0.000000e+00> : vector<8x256xf32>
    %15 = tpu.matmul %14, %13, %cst_14 {dimension_numbers = #tpu.dot_dimension_numbers<[1], [0], [0], [1], [0, 0, 1, 1], [], []>} : vector<8x32xf32>, vector<32x256xf32>, vector<8x256xf32> -> vector<8x256xf32>
    %16 = vector.extract_strided_slice %9 {offsets = [0, 32], sizes = [8, 1], strides = [1, 1]} : vector<8x33xf32> to vector<8x1xf32>
    %17 = vector.broadcast %16 : vector<8x1xf32> to vector<8x256xf32>
    %18 = arith.addf %15, %17 : vector<8x256xf32>
    %19 = math.tanh %18 : vector<8x256xf32>
    %20 = vector.extract_strided_slice %11 {offsets = [0, 0], sizes = [8, 32], strides = [1, 1]} : vector<8x33xf32> to vector<8x32xf32>
    %cst_15 = arith.constant dense<0.000000e+00> : vector<8x256xf32>
    %21 = tpu.matmul %20, %13, %cst_15 {dimension_numbers = #tpu.dot_dimension_numbers<[1], [0], [0], [1], [0, 0, 1, 1], [], []>} : vector<8x32xf32>, vector<32x256xf32>, vector<8x256xf32> -> vector<8x256xf32>
    %22 = vector.extract_strided_slice %11 {offsets = [0, 32], sizes = [8, 1], strides = [1, 1]} : vector<8x33xf32> to vector<8x1xf32>
    %23 = vector.broadcast %22 : vector<8x1xf32> to vector<8x256xf32>
    %24 = arith.addf %21, %23 : vector<8x256xf32>
    %25 = math.exp %19 : vector<8x256xf32>
    %26 = arith.mulf %4, %25 : vector<8x256xf32>
    %27 = arith.addf %26, %24 : vector<8x256xf32>
    %cst_16 = arith.constant dense<0.000000e+00> : vector<256xf32>
    %28 = vector.multi_reduction <add>, %19, %cst_16 [0] : vector<8x256xf32> to vector<256xf32>
    %29 = vector.shape_cast %28 : vector<256xf32> to vector<1x256xf32>
    %30 = arith.addf %5, %29 : vector<1x256xf32>
    %c1 = arith.constant 1 : index
    %c0_17 = arith.constant 0 : index
    %c0_18 = arith.constant 0 : index
    %31 = vector.load %arg2[%c1, %c0_17, %c0_18] : memref<4x32x8xf32, #tpu.memory_space<vmem>>, vector<1x32x8xf32>
    %32 = vector.shape_cast %31 : vector<1x32x8xf32> to vector<32x8xf32>
    %c1_19 = arith.constant 1 : index
    %c0_20 = arith.constant 0 : index
    %c0_21 = arith.constant 0 : index
    %33 = vector.load %arg3[%c1_19, %c0_20, %c0_21] : memref<4x8x33xf32, #tpu.memory_space<vmem>>, vector<1x8x33xf32>
    %34 = vector.shape_cast %33 : vector<1x8x33xf32> to vector<8x33xf32>
    %c1_22 = arith.constant 1 : index
    %c0_23 = arith.constant 0 : index
    %c0_24 = arith.constant 0 : index
    %35 = vector.load %arg4[%c1_22, %c0_23, %c0_24] : memref<4x8x33xf32, #tpu.memory_space<vmem>>, vector<1x8x33xf32>
    %36 = vector.shape_cast %35 : vector<1x8x33xf32> to vector<8x33xf32>
    %cst_25 = arith.constant dense<0.000000e+00> : vector<32x256xf32>
    %37 = tpu.matmul %32, %27, %cst_25 {dimension_numbers = #tpu.dot_dimension_numbers<[1], [0], [0], [1], [0, 0, 1, 1], [], []>} : vector<32x8xf32>, vector<8x256xf32>, vector<32x256xf32> -> vector<32x256xf32>
    %38 = math.tanh %37 : vector<32x256xf32>
    %39 = vector.extract_strided_slice %34 {offsets = [0, 0], sizes = [8, 32], strides = [1, 1]} : vector<8x33xf32> to vector<8x32xf32>
    %cst_26 = arith.constant dense<0.000000e+00> : vector<8x256xf32>
    %40 = tpu.matmul %39, %38, %cst_26 {dimension_numbers = #tpu.dot_dimension_numbers<[1], [0], [0], [1], [0, 0, 1, 1], [], []>} : vector<8x32xf32>, vector<32x256xf32>, vector<8x256xf32> -> vector<8x256xf32>
    %41 = vector.extract_strided_slice %34 {offsets = [0, 32], sizes = [8, 1], strides = [1, 1]} : vector<8x33xf32> to vector<8x1xf32>
    %42 = vector.broadcast %41 : vector<8x1xf32> to vector<8x256xf32>
    %43 = arith.addf %40, %42 : vector<8x256xf32>
    %44 = math.tanh %43 : vector<8x256xf32>
    %45 = vector.extract_strided_slice %36 {offsets = [0, 0], sizes = [8, 32], strides = [1, 1]} : vector<8x33xf32> to vector<8x32xf32>
    %cst_27 = arith.constant dense<0.000000e+00> : vector<8x256xf32>
    %46 = tpu.matmul %45, %38, %cst_27 {dimension_numbers = #tpu.dot_dimension_numbers<[1], [0], [0], [1], [0, 0, 1, 1], [], []>} : vector<8x32xf32>, vector<32x256xf32>, vector<8x256xf32> -> vector<8x256xf32>
    %47 = vector.extract_strided_slice %36 {offsets = [0, 32], sizes = [8, 1], strides = [1, 1]} : vector<8x33xf32> to vector<8x1xf32>
    %48 = vector.broadcast %47 : vector<8x1xf32> to vector<8x256xf32>
    %49 = arith.addf %46, %48 : vector<8x256xf32>
    %50 = math.exp %44 : vector<8x256xf32>
    %51 = arith.mulf %27, %50 : vector<8x256xf32>
    %52 = arith.addf %51, %49 : vector<8x256xf32>
    %cst_28 = arith.constant dense<0.000000e+00> : vector<256xf32>
    %53 = vector.multi_reduction <add>, %44, %cst_28 [0] : vector<8x256xf32> to vector<256xf32>
    %54 = vector.shape_cast %53 : vector<256xf32> to vector<1x256xf32>
    %55 = arith.addf %30, %54 : vector<1x256xf32>
    %c2 = arith.constant 2 : index
    %c0_29 = arith.constant 0 : index
    %c0_30 = arith.constant 0 : index
    %56 = vector.load %arg2[%c2, %c0_29, %c0_30] : memref<4x32x8xf32, #tpu.memory_space<vmem>>, vector<1x32x8xf32>
    %57 = vector.shape_cast %56 : vector<1x32x8xf32> to vector<32x8xf32>
    %c2_31 = arith.constant 2 : index
    %c0_32 = arith.constant 0 : index
    %c0_33 = arith.constant 0 : index
    %58 = vector.load %arg3[%c2_31, %c0_32, %c0_33] : memref<4x8x33xf32, #tpu.memory_space<vmem>>, vector<1x8x33xf32>
    %59 = vector.shape_cast %58 : vector<1x8x33xf32> to vector<8x33xf32>
    %c2_34 = arith.constant 2 : index
    %c0_35 = arith.constant 0 : index
    %c0_36 = arith.constant 0 : index
    %60 = vector.load %arg4[%c2_34, %c0_35, %c0_36] : memref<4x8x33xf32, #tpu.memory_space<vmem>>, vector<1x8x33xf32>
    %61 = vector.shape_cast %60 : vector<1x8x33xf32> to vector<8x33xf32>
    %cst_37 = arith.constant dense<0.000000e+00> : vector<32x256xf32>
    %62 = tpu.matmul %57, %52, %cst_37 {dimension_numbers = #tpu.dot_dimension_numbers<[1], [0], [0], [1], [0, 0, 1, 1], [], []>} : vector<32x8xf32>, vector<8x256xf32>, vector<32x256xf32> -> vector<32x256xf32>
    %63 = math.tanh %62 : vector<32x256xf32>
    %64 = vector.extract_strided_slice %59 {offsets = [0, 0], sizes = [8, 32], strides = [1, 1]} : vector<8x33xf32> to vector<8x32xf32>
    %cst_38 = arith.constant dense<0.000000e+00> : vector<8x256xf32>
    %65 = tpu.matmul %64, %63, %cst_38 {dimension_numbers = #tpu.dot_dimension_numbers<[1], [0], [0], [1], [0, 0, 1, 1], [], []>} : vector<8x32xf32>, vector<32x256xf32>, vector<8x256xf32> -> vector<8x256xf32>
    %66 = vector.extract_strided_slice %59 {offsets = [0, 32], sizes = [8, 1], strides = [1, 1]} : vector<8x33xf32> to vector<8x1xf32>
    %67 = vector.broadcast %66 : vector<8x1xf32> to vector<8x256xf32>
    %68 = arith.addf %65, %67 : vector<8x256xf32>
    %69 = math.tanh %68 : vector<8x256xf32>
    %70 = vector.extract_strided_slice %61 {offsets = [0, 0], sizes = [8, 32], strides = [1, 1]} : vector<8x33xf32> to vector<8x32xf32>
    %cst_39 = arith.constant dense<0.000000e+00> : vector<8x256xf32>
    %71 = tpu.matmul %70, %63, %cst_39 {dimension_numbers = #tpu.dot_dimension_numbers<[1], [0], [0], [1], [0, 0, 1, 1], [], []>} : vector<8x32xf32>, vector<32x256xf32>, vector<8x256xf32> -> vector<8x256xf32>
    %72 = vector.extract_strided_slice %61 {offsets = [0, 32], sizes = [8, 1], strides = [1, 1]} : vector<8x33xf32> to vector<8x1xf32>
    %73 = vector.broadcast %72 : vector<8x1xf32> to vector<8x256xf32>
    %74 = arith.addf %71, %73 : vector<8x256xf32>
    %75 = math.exp %69 : vector<8x256xf32>
    %76 = arith.mulf %52, %75 : vector<8x256xf32>
    %77 = arith.addf %76, %74 : vector<8x256xf32>
    %cst_40 = arith.constant dense<0.000000e+00> : vector<256xf32>
    %78 = vector.multi_reduction <add>, %69, %cst_40 [0] : vector<8x256xf32> to vector<256xf32>
    %79 = vector.shape_cast %78 : vector<256xf32> to vector<1x256xf32>
    %80 = arith.addf %55, %79 : vector<1x256xf32>
    %c3 = arith.constant 3 : index
    %c0_41 = arith.constant 0 : index
    %c0_42 = arith.constant 0 : index
    %81 = vector.load %arg2[%c3, %c0_41, %c0_42] : memref<4x32x8xf32, #tpu.memory_space<vmem>>, vector<1x32x8xf32>
    %82 = vector.shape_cast %81 : vector<1x32x8xf32> to vector<32x8xf32>
    %c3_43 = arith.constant 3 : index
    %c0_44 = arith.constant 0 : index
    %c0_45 = arith.constant 0 : index
    %83 = vector.load %arg3[%c3_43, %c0_44, %c0_45] : memref<4x8x33xf32, #tpu.memory_space<vmem>>, vector<1x8x33xf32>
    %84 = vector.shape_cast %83 : vector<1x8x33xf32> to vector<8x33xf32>
    %c3_46 = arith.constant 3 : index
    %c0_47 = arith.constant 0 : index
    %c0_48 = arith.constant 0 : index
    %85 = vector.load %arg4[%c3_46, %c0_47, %c0_48] : memref<4x8x33xf32, #tpu.memory_space<vmem>>, vector<1x8x33xf32>
    %86 = vector.shape_cast %85 : vector<1x8x33xf32> to vector<8x33xf32>
    %cst_49 = arith.constant dense<0.000000e+00> : vector<32x256xf32>
    %87 = tpu.matmul %82, %77, %cst_49 {dimension_numbers = #tpu.dot_dimension_numbers<[1], [0], [0], [1], [0, 0, 1, 1], [], []>} : vector<32x8xf32>, vector<8x256xf32>, vector<32x256xf32> -> vector<32x256xf32>
    %88 = math.tanh %87 : vector<32x256xf32>
    %89 = vector.extract_strided_slice %84 {offsets = [0, 0], sizes = [8, 32], strides = [1, 1]} : vector<8x33xf32> to vector<8x32xf32>
    %cst_50 = arith.constant dense<0.000000e+00> : vector<8x256xf32>
    %90 = tpu.matmul %89, %88, %cst_50 {dimension_numbers = #tpu.dot_dimension_numbers<[1], [0], [0], [1], [0, 0, 1, 1], [], []>} : vector<8x32xf32>, vector<32x256xf32>, vector<8x256xf32> -> vector<8x256xf32>
    %91 = vector.extract_strided_slice %84 {offsets = [0, 32], sizes = [8, 1], strides = [1, 1]} : vector<8x33xf32> to vector<8x1xf32>
    %92 = vector.broadcast %91 : vector<8x1xf32> to vector<8x256xf32>
    %93 = arith.addf %90, %92 : vector<8x256xf32>
    %94 = math.tanh %93 : vector<8x256xf32>
    %95 = vector.extract_strided_slice %86 {offsets = [0, 0], sizes = [8, 32], strides = [1, 1]} : vector<8x33xf32> to vector<8x32xf32>
    %cst_51 = arith.constant dense<0.000000e+00> : vector<8x256xf32>
    %96 = tpu.matmul %95, %88, %cst_51 {dimension_numbers = #tpu.dot_dimension_numbers<[1], [0], [0], [1], [0, 0, 1, 1], [], []>} : vector<8x32xf32>, vector<32x256xf32>, vector<8x256xf32> -> vector<8x256xf32>
    %97 = vector.extract_strided_slice %86 {offsets = [0, 32], sizes = [8, 1], strides = [1, 1]} : vector<8x33xf32> to vector<8x1xf32>
    %98 = vector.broadcast %97 : vector<8x1xf32> to vector<8x256xf32>
    %99 = arith.addf %96, %98 : vector<8x256xf32>
    %100 = math.exp %94 : vector<8x256xf32>
    %101 = arith.mulf %77, %100 : vector<8x256xf32>
    %102 = arith.addf %101, %99 : vector<8x256xf32>
    %cst_52 = arith.constant dense<0.000000e+00> : vector<256xf32>
    %103 = vector.multi_reduction <add>, %94, %cst_52 [0] : vector<8x256xf32> to vector<256xf32>
    %104 = vector.shape_cast %103 : vector<256xf32> to vector<1x256xf32>
    %105 = arith.addf %80, %104 : vector<1x256xf32>
    %106 = vector.extract_strided_slice %102 {offsets = [0, 0], sizes = [1, 256], strides = [1, 1]} : vector<8x256xf32> to vector<1x256xf32>
    %107 = vector.extract_strided_slice %102 {offsets = [0, 0], sizes = [1, 256], strides = [1, 1]} : vector<8x256xf32> to vector<1x256xf32>
    %108 = arith.mulf %106, %107 : vector<1x256xf32>
    %109 = vector.extract_strided_slice %102 {offsets = [1, 0], sizes = [1, 256], strides = [1, 1]} : vector<8x256xf32> to vector<1x256xf32>
    %110 = vector.extract_strided_slice %102 {offsets = [1, 0], sizes = [1, 256], strides = [1, 1]} : vector<8x256xf32> to vector<1x256xf32>
    %111 = arith.mulf %109, %110 : vector<1x256xf32>
    %112 = arith.addf %108, %111 : vector<1x256xf32>
    %cst_53 = arith.constant -5.000000e-01 : f32
    %113 = vector.broadcast %cst_53 : f32 to vector<1x256xf32>
    %114 = arith.mulf %113, %112 : vector<1x256xf32>
    %cst_54 = arith.constant 1.83787704 : f32
    %115 = vector.broadcast %cst_54 : f32 to vector<1x256xf32>
    %116 = arith.subf %114, %115 : vector<1x256xf32>
    %117 = arith.addf %116, %105 : vector<1x256xf32>
    %118 = math.exp %117 : vector<1x256xf32>
    %119 = vector.extract_strided_slice %102 {offsets = [0, 0], sizes = [3, 256], strides = [1, 1]} : vector<8x256xf32> to vector<3x256xf32>
    %120 = tpu.concatenate %119, %116, %105, %118, %2 in 0 : vector<3x256xf32>, vector<1x256xf32>, vector<1x256xf32>, vector<1x256xf32>, vector<2x256xf32> -> vector<8x256xf32>
    %c0_55 = arith.constant 0 : index
    %c0_56 = arith.constant 0 : index
    %121 = vector.load %arg5[%c0_55, %c0_56] : memref<8x256xf32, #tpu.memory_space<vmem>>, vector<8x256xf32>
    tpu.vector_store %arg5[%c0_55, %c0_56], %120 {strides = array<i32>} : memref<8x256xf32, #tpu.memory_space<vmem>>, vector<8x256xf32>,
    return
  }
  func.func @transform_0(%arg0: i32) -> (i32, i32) {
    %c0_i32 = arith.constant 0 : i32
    %c0_i32_0 = arith.constant 0 : i32
    return %c0_i32, %arg0 : i32, i32
  }
  func.func @transform_1(%arg0: i32) -> (i32, i32, i32) {
    %c0_i32 = arith.constant 0 : i32
    %c0_i32_0 = arith.constant 0 : i32
    %c0_i32_1 = arith.constant 0 : i32
    %c0_i32_2 = arith.constant 0 : i32
    return %c0_i32, %c0_i32_0, %c0_i32_1 : i32, i32, i32
  }
  func.func @transform_2(%arg0: i32) -> (i32, i32, i32) {
    %c0_i32 = arith.constant 0 : i32
    %c0_i32_0 = arith.constant 0 : i32
    %c0_i32_1 = arith.constant 0 : i32
    %c0_i32_2 = arith.constant 0 : i32
    return %c0_i32, %c0_i32_0, %c0_i32_1 : i32, i32, i32
  }
  func.func @transform_3(%arg0: i32) -> (i32, i32, i32) {
    %c0_i32 = arith.constant 0 : i32
    %c0_i32_0 = arith.constant 0 : i32
    %c0_i32_1 = arith.constant 0 : i32
    %c0_i32_2 = arith.constant 0 : i32
    return %c0_i32, %c0_i32_0, %c0_i32_1 : i32, i32, i32
  }
  func.func @transform_4(%arg0: i32) -> (i32, i32) {
    %c0_i32 = arith.constant 0 : i32
    %c0_i32_0 = arith.constant 0 : i32
    return %c0_i32, %arg0 : i32, i32
  }
}

</mosaic_0001>

<bundles_post_ra>
// kernel: _nf_forward_slab.1
= control target key start
LH: loop header
LB: loop body
LE: loop exit
PB: predicated region body
PF: predicated region fallthrough
CT: control target
= control target key end

     0   :  { %s1338_s0 = inlined_call_operand.vmem [shape: f32[3,256], index: 0, kind: input, shape index: {}]   ;;  %s1339_s1 = inlined_call_operand.vmem [shape: f32[4,32,8], index: 1, kind: input, shape index: {}]   ;;  %s1340_s2 = inlined_call_operand.vmem [shape: f32[4,8,33], index: 2, kind: input, shape index: {}]   ;;  %s1341_s3 = inlined_call_operand.vmem [shape: f32[4,8,33], index: 3, kind: input, shape index: {}]   ;;  %s1342_s4 = inlined_call_operand.hbm [shape: f32[8,256], index: 4, kind: output, shape index: {}]  }
   0x1   :  { %v18_v0 = vld [vmem:[%s1338_s0] sm:$0x77] }
   0x2   :  { %20 = vst [vmem:[#allocation1] ss:$2 sm:$0xff] %v18_v0 }
   0x3   :  { %9 = vsyncpa [#allocation3], 0  ;;  %vm25_vm0 = vcmask 1042432   ;;  %vm28_vm1 = vcmask 1043456   ;;  %v31_v1 = vld [vmem:[%s1339_s1] sm:$0xff]  ;;  %vm37_vm2 = vcmask 64512  }
   0x4   :  { %v32_v6 = vld [vmem:[%s1339_s1 + $0x8] sm:$0xff]  ;;  %v33_v7 = vld [vmem:[%s1339_s1 + $0x10] sm:$0xff]  ;;  %v34_v8 = vld [vmem:[%s1339_s1 + $0x18] sm:$0xff]  ;;  %v1111_v14 = vmov 32   ;;  %vm121_vm3 = vcmask 261120   ;;  %vm886_vm4 = vcmask 1044480  }
   0x5   :  { %v35_v11 = vld [vmem:[%s1340_s2] sm:$0xff]  ;;  %982 = vset.pattern.permute.xlu0 %v1111_v14  ;;  %983 = vset.pattern.permute.xlu1 %v1111_v14  ;;  %v1180_v18 = vld [vmem:[%s1340_s2 + $0x18] sm:$0xff]  ;;  %v925_v52 = vld [vmem:[%s1339_s1 + $0x28] sm:$0xff]  ;;  %vm889_vm5 = vcmask 1045504   ;;  %s901_s12 = sshll.u32 %s1342_s4, 4  ;;  %s902_s12 = int_to_ptr.hbm [resolvable:$true] %s901_s12 }
   0x6   :  { %118 = vperm.xlu0 %982, %v35_v11   ;;  %984 = vset.pattern.permute.xlu2 %v1111_v14  ;;  %v36_v15 = vld [vmem:[%s1341_s3] sm:$0xff]  ;;  %v926_v53 = vld [vmem:[%s1339_s1 + $0x30] sm:$0xff]  ;;  %v927_v54 = vld [vmem:[%s1339_s1 + $0x38] sm:$0xff] }
   0x7   :  { %v924_v50 = vld [vmem:[%s1339_s1 + $0x20] sm:$0xff]  ;;  %v928_v57 = vld [vmem:[%s1340_s2 + $0x8] sm:$0xff]  ;;  %v1232_v63 = vld [vmem:[%s1341_s3 + $0x18] sm:$0xff] }
   0x8   :  { %324 = vperm.xlu1 %983, %v928_v57   ;;  %v929_v60 = vld [vmem:[%s1341_s3 + $0x8] sm:$0xff] }
   0x9   :  { %v21_v2 = vld.sshfl [vmem:[#allocation1] sm:$0xff pattern:$0x75316420]  ;;  %v22_v3 = vld.sshfl [vmem:[#allocation1 + $0x8] sm:$0xff pattern:$0x75316420] }
   0xa   :  { %v1145_v4 = vsel %vm25_vm0, %v21_v2, 1.0  ;;  %v1148_v5 = vsel %vm25_vm0, %v22_v3, 1.0 }
   0xb   :  { %910 = vmatpush.msk.msra.mxu0 %vm28_vm1, %v1145_v4  ;;  %915 = vmatpush.msk.msra.mxu1 %vm28_vm1, %v1148_v5  ;;  %v29_v38 = vsel %vm28_vm1, %v1145_v4, 0.0  ;;  %v30_v40 = vsel %vm28_vm1, %v1148_v5, 0.0 }
   0xc   :  { %911 = vmatmul.msk.f32.vlgmr.msra.gmra.mxu0 %vm37_vm2, %v31_v1  ;;  %916 = vmatmul.msk.f32.vlgmr.msra.gmra.mxu1 %vm37_vm2, %v31_v1 }
   0xe   :  { %168 = vperm.xlu0 %982, %v36_v15  }
  0x10   :  { %373 = vperm.xlu1 %983, %v929_v60  }
  0x14   :  { %912 = vmatmul.msk.f32.gmra.mxu0 %vm37_vm2, %v32_v6  ;;  %917 = vmatmul.msk.f32.gmra.mxu1 %vm37_vm2, %v32_v6 }
  0x16   :  { %734 = vperm.xlu0 %982, %v1180_v18  }
  0x18   :  { %783 = vperm.xlu1 %983, %v1232_v63  }
  0x1c   :  { %913 = vmatmul.msk.f32.gmra.mxu0 %vm37_vm2, %v33_v7  ;;  %918 = vmatmul.msk.f32.gmra.mxu1 %vm37_vm2, %v33_v7 }
  0x24   :  { %914 = vmatmul.msk.f32.gmra.mxu0 %vm37_vm2, %v34_v8  ;;  %919 = vmatmul.msk.f32.gmra.mxu1 %vm37_vm2, %v34_v8 }
  0x78   :  { %v119_v29 = vpop.permute.xlu0 %118 }
  0x80   :  { %v169_v43 = vpop.permute.xlu0 %168 }
  0x89   :  { %v67_v9 = vpop.f32.mrf.mxu0  ;;  %v96_v10 = vpop.f32.mrf.mxu1 }
  0x91   :  { %v70_v12 = vpop.f32.mrf.mxu0  ;;  %v99_v13 = vpop.f32.mrf.mxu1 }
  0x99   :  { %v73_v16 = vpop.f32.mrf.mxu0  ;;  %v102_v17 = vpop.f32.mrf.mxu1 }
  0xa1   :  { %v76_v19 = vpop.f32.mrf.mxu0  ;;  %v105_v20 = vpop.f32.mrf.mxu1 }
  0xa2   :  { %985 = vtanh.f32 %v76_v19 }
  0xa3   :  { %987 = vtanh.f32 %v105_v20 }
  0xa4   :  { %989 = vtanh.f32 %v73_v16 }
  0xa5   :  { %991 = vtanh.f32 %v102_v17 }
  0xa6   :  { %993 = vtanh.f32 %v70_v12 }
  0xa7   :  { %995 = vtanh.f32 %v99_v13 }
  0xa8   :  { %v986_v21 = vpop.eup %985  ;;  %997 = vtanh.f32 %v67_v9 }
  0xa9   :  { %v988_v22 = vpop.eup %987  ;;  %999 = vtanh.f32 %v96_v10  ;;  %136 = vmatpush.msra.mxu2 %v986_v21 }
  0xaa   :  { %v990_v23 = vpop.eup %989  ;;  %156 = vmatpush.msra.mxu3 %v988_v22 }
  0xab   :  { %v992_v24 = vpop.eup %991  ;;  %137 = vmatpush.msra.mxu2 %v990_v23 }
  0xac   :  { %v994_v25 = vpop.eup %993  ;;  %157 = vmatpush.msra.mxu3 %v992_v24 }
  0xad   :  { %v996_v26 = vpop.eup %995  ;;  %138 = vmatpush.msra.mxu2 %v994_v25 }
  0xae   :  { %v998_v27 = vpop.eup %997  ;;  %158 = vmatpush.msra.mxu3 %v996_v26 }
  0xaf   :  { %v1000_v28 = vpop.eup %999  ;;  %139 = vmatpush.msra.mxu2 %v998_v27 }
  0xb0   :  { %159 = vmatpush.msra.mxu3 %v1000_v28  ;;  %920 = vmatmul.msk.f32.vlgmr.msra.gmra.mxu2 %vm121_vm3, %v35_v11 }
  0xb1   :  { %921 = vmatmul.msk.f32.vlgmr.msra.gmra.mxu3 %vm121_vm3, %v35_v11  ;;  %185 = vmatpush.msrb.mxu2 %v986_v21  ;;  %v325_v11 = vpop.permute.xlu1 %324 }
  0xb2   :  { %205 = vmatpush.msrb.mxu3 %v988_v22 }
  0xb3   :  { %186 = vmatpush.msrb.mxu2 %v990_v23 }
  0xb4   :  { %206 = vmatpush.msrb.mxu3 %v992_v24 }
  0xb5   :  { %187 = vmatpush.msrb.mxu2 %v994_v25 }
  0xb6   :  { %207 = vmatpush.msrb.mxu3 %v996_v26 }
  0xb7   :  { %188 = vmatpush.msrb.mxu2 %v998_v27 }
  0xb8   :  { %208 = vmatpush.msrb.mxu3 %v1000_v28  ;;  %922 = vmatmul.msk.f32.vlgmr.msrb.gmra.mxu2 %vm121_vm3, %v36_v15 }
  0xb9   :  { %923 = vmatmul.msk.f32.vlgmr.msrb.gmra.mxu3 %vm121_vm3, %v36_v15 }
 0x133   :  { %v141_v30 = vpop.f32.mrf.mxu2 }
 0x134   :  { %v142_v31 = vadd.f32 %v141_v30, %v119_v29  ;;  %v161_v32 = vpop.f32.mrf.mxu3 }
 0x135   :  { %v162_v33 = vadd.f32 %v161_v32, %v119_v29 }
 0x136   :  { %1001 = vtanh.f32 %v142_v31 }
 0x137   :  { %1003 = vtanh.f32 %v162_v33 }
 0x13b   :  { %v190_v39 = vpop.f32.mrf.mxu2 }
 0x13c   :  { %v1187_v34 = vpop.eup %1001  ;;  %v210_v41 = vpop.f32.mrf.mxu3  ;;  %v191_v45 = vadd.f32 %v190_v39, %v169_v43 }
 0x13d   :  { %v1189_v35 = vpop.eup %1003  ;;  %v213_v36 = vmul.f32 1.442695, %v1187_v34  ;;  %v211_v47 = vadd.f32 %v210_v41, %v169_v43  ;;  %v221_v10 = vrot.slane %v1187_v34, 4  ;;  %v374_v41 = vpop.permute.xlu1 %373 }
 0x13e   :  { %v215_v37 = vmul.f32 1.442695, %v1189_v35  ;;  %v227_v13 = vrot.slane %v1189_v35, 4 }
 0x13f   :  { %1005 = vpow2.f32 %v213_v36  ;;  %v222_v17 = vadd.f32 %v1187_v34, %v221_v10 }
 0x140   :  { %1007 = vpow2.f32 %v215_v37  ;;  %v228_v19 = vadd.f32 %v1189_v35, %v227_v13 }
 0x141   :  { %v223_v20 = vrot.slane %v222_v17, 2 }
 0x142   :  { %v229_v22 = vrot.slane %v228_v19, 2 }
 0x143   :  { %v224_v28 = vadd.f32 %v223_v20, %v222_v17 }
 0x144   :  { %v230_v30 = vadd.f32 %v229_v22, %v228_v19 }
 0x145   :  { %v1006_v42 = vpop.eup %1005  ;;  %v225_v37 = vrot.slane %v224_v28, 1 }
 0x146   :  { %v1008_v44 = vpop.eup %1007  ;;  %v217_v46 = vmul.f32 %v1006_v42, %v29_v38  ;;  %v231_v39 = vrot.slane %v230_v30, 1 }
 0x147   :  { %v218_v48 = vmul.f32 %v1008_v44, %v30_v40 }
 0x148   :  { %v1197_v49 = vadd.f32 %v217_v46, %v191_v45 }
 0x149   :  { %v1202_v51 = vadd.f32 %v218_v48, %v211_v47 }
 0x14a   :  { %271 = vmatpush.msra.mxu2 %v1197_v49 }
 0x14b   :  { %300 = vmatpush.msra.mxu3 %v1202_v51  ;;  %930 = vmatmul.msk.f32.vlgmr.msra.gmra.mxu2 %vm37_vm2, %v924_v50 }
 0x14c   :  { %934 = vmatmul.msk.f32.vlgmr.msra.gmra.mxu3 %vm37_vm2, %v924_v50  ;;  %v226_v50 = vadd.f32 %v225_v37, %v224_v28 }
 0x153   :  { %931 = vmatmul.msk.f32.gmra.mxu2 %vm37_vm2, %v925_v52 }
 0x154   :  { %935 = vmatmul.msk.f32.gmra.mxu3 %vm37_vm2, %v925_v52 }
 0x15b   :  { %932 = vmatmul.msk.f32.gmra.mxu2 %vm37_vm2, %v926_v53 }
 0x15c   :  { %936 = vmatmul.msk.f32.gmra.mxu3 %vm37_vm2, %v926_v53 }
 0x163   :  { %933 = vmatmul.msk.f32.gmra.mxu2 %vm37_vm2, %v927_v54 }
 0x164   :  { %937 = vmatmul.msk.f32.gmra.mxu3 %vm37_vm2, %v927_v54  ;;  %v942_v54 = vld [vmem:[%s1339_s1 + $0x40] sm:$0xff] }
 0x1ce   :  { %v273_v55 = vpop.f32.mrf.mxu2 }
 0x1cf   :  { %v302_v56 = vpop.f32.mrf.mxu3 }
 0x1d6   :  { %v276_v58 = vpop.f32.mrf.mxu2 }
 0x1d7   :  { %v305_v59 = vpop.f32.mrf.mxu3 }
 0x1de   :  { %v279_v61 = vpop.f32.mrf.mxu2 }
 0x1df   :  { %v308_v62 = vpop.f32.mrf.mxu3 }
 0x1e6   :  { %v282_v0 = vpop.f32.mrf.mxu2 }
 0x1e7   :  { %1009 = vtanh.f32 %v282_v0  ;;  %v311_v1 = vpop.f32.mrf.mxu3  ;;  %v946_v0 = vld [vmem:[%s1340_s2 + $0x10] sm:$0xff] }
 0x1e8   :  { %1011 = vtanh.f32 %v311_v1  ;;  %529 = vperm.xlu2 %984, %v946_v0  }
 0x1e9   :  { %1013 = vtanh.f32 %v279_v61 }
 0x1ea   :  { %1015 = vtanh.f32 %v308_v62 }
 0x1eb   :  { %1017 = vtanh.f32 %v276_v58 }
 0x1ec   :  { %1019 = vtanh.f32 %v305_v59  ;;  %v944_v59 = vld [vmem:[%s1339_s1 + $0x50] sm:$0xff] }
 0x1ed   :  { %v1010_v2 = vpop.eup %1009  ;;  %1021 = vtanh.f32 %v273_v55  ;;  %v232_v55 = vadd.f32 %v231_v39, %v230_v30 }
 0x1ee   :  { %v1012_v3 = vpop.eup %1011  ;;  %1023 = vtanh.f32 %v302_v56  ;;  %341 = vmatpush.msrb.mxu0 %v1010_v2 }
 0x1ef   :  { %v1014_v4 = vpop.eup %1013  ;;  %361 = vmatpush.msrb.mxu1 %v1012_v3 }
 0x1f0   :  { %v1016_v5 = vpop.eup %1015  ;;  %342 = vmatpush.msrb.mxu0 %v1014_v4 }
 0x1f1   :  { %v1018_v6 = vpop.eup %1017  ;;  %362 = vmatpush.msrb.mxu1 %v1016_v5 }
 0x1f2   :  { %v1020_v7 = vpop.eup %1019  ;;  %343 = vmatpush.msrb.mxu0 %v1018_v6 }
 0x1f3   :  { %v1022_v8 = vpop.eup %1021  ;;  %363 = vmatpush.msrb.mxu1 %v1020_v7 }
 0x1f4   :  { %v1024_v9 = vpop.eup %1023  ;;  %344 = vmatpush.msrb.mxu0 %v1022_v8 }
 0x1f5   :  { %364 = vmatpush.msrb.mxu1 %v1024_v9  ;;  %938 = vmatmul.msk.f32.vlgmr.msrb.gmra.mxu0 %vm121_vm3, %v928_v57 }
 0x1f6   :  { %939 = vmatmul.msk.f32.vlgmr.msrb.gmra.mxu1 %vm121_vm3, %v928_v57  ;;  %390 = vmatpush.msra.mxu0 %v1010_v2 }
 0x1f7   :  { %410 = vmatpush.msra.mxu1 %v1012_v3  ;;  %v947_v3 = vld [vmem:[%s1341_s3 + $0x10] sm:$0xff] }
 0x1f8   :  { %391 = vmatpush.msra.mxu0 %v1014_v4  ;;  %578 = vperm.xlu2 %984, %v947_v3  }
 0x1f9   :  { %411 = vmatpush.msra.mxu1 %v1016_v5 }
 0x1fa   :  { %392 = vmatpush.msra.mxu0 %v1018_v6 }
 0x1fb   :  { %412 = vmatpush.msra.mxu1 %v1020_v7 }
 0x1fc   :  { %393 = vmatpush.msra.mxu0 %v1022_v8 }
 0x1fd   :  { %413 = vmatpush.msra.mxu1 %v1024_v9  ;;  %940 = vmatmul.msk.f32.vlgmr.msra.gmra.mxu0 %vm121_vm3, %v929_v60 }
 0x1fe   :  { %941 = vmatmul.msk.f32.vlgmr.msra.gmra.mxu1 %vm121_vm3, %v929_v60  ;;  %v945_v60 = vld [vmem:[%s1339_s1 + $0x58] sm:$0xff] }
 0x272   :  { %v346_v12 = vpop.f32.mrf.mxu0 }
 0x273   :  { %v347_v14 = vadd.f32 %v346_v12, %v325_v11  ;;  %v366_v15 = vpop.f32.mrf.mxu1 }
 0x274   :  { %v367_v16 = vadd.f32 %v366_v15, %v325_v11 }
 0x275   :  { %1025 = vtanh.f32 %v347_v14 }
 0x276   :  { %1027 = vtanh.f32 %v367_v16  ;;  %v530_v16 = vpop.permute.xlu2 %529 }
 0x27a   :  { %v395_v36 = vpop.f32.mrf.mxu0 }
 0x27b   :  { %v1026_v21 = vpop.eup %1025  ;;  %v415_v38 = vpop.f32.mrf.mxu1  ;;  %v396_v44 = vadd.f32 %v395_v36, %v374_v41 }
 0x27c   :  { %v1028_v23 = vpop.eup %1027  ;;  %v426_v24 = vrot.slane %v1026_v21, 4  ;;  %v418_v25 = vmul.f32 1.442695, %v1026_v21  ;;  %v416_v47 = vadd.f32 %v415_v38, %v374_v41 }
 0x27d   :  { %v432_v26 = vrot.slane %v1028_v23, 4  ;;  %v420_v27 = vmul.f32 1.442695, %v1028_v23 }
 0x27e   :  { %v427_v29 = vadd.f32 %v1026_v21, %v426_v24  ;;  %1029 = vpow2.f32 %v418_v25 }
 0x27f   :  { %v433_v31 = vadd.f32 %v1028_v23, %v432_v26  ;;  %1031 = vpow2.f32 %v420_v27 }
 0x280   :  { %v428_v32 = vrot.slane %v427_v29, 2 }
 0x281   :  { %v434_v33 = vrot.slane %v433_v31, 2 }
 0x282   :  { %v429_v34 = vadd.f32 %v428_v32, %v427_v29 }
 0x283   :  { %v435_v35 = vadd.f32 %v434_v33, %v433_v31 }
 0x284   :  { %v1030_v40 = vpop.eup %1029  ;;  %v430_v42 = vrot.slane %v429_v34, 1 }
 0x285   :  { %v1032_v43 = vpop.eup %1031  ;;  %v422_v45 = vmul.f32 %v1030_v40, %v1197_v49  ;;  %v436_v46 = vrot.slane %v435_v35, 1 }
 0x286   :  { %v423_v48 = vmul.f32 %v1032_v43, %v1202_v51  ;;  %v431_v52 = vadd.f32 %v430_v42, %v429_v34  ;;  %v943_v51 = vld [vmem:[%s1339_s1 + $0x48] sm:$0xff] }
 0x287   :  { %v1245_v53 = vadd.f32 %v422_v45, %v396_v44  ;;  %v437_v56 = vadd.f32 %v436_v46, %v435_v35  ;;  %v579_v35 = vpop.permute.xlu2 %578 }
 0x288   :  { %v1250_v57 = vadd.f32 %v423_v48, %v416_v47  ;;  %v1252_v58 = vadd.f32 %v431_v52, %v226_v50  ;;  %v960_v47 = vld [vmem:[%s1339_s1 + $0x60] sm:$0xff] }
 0x289   :  { %476 = vmatpush.msrb.mxu0 %v1245_v53  ;;  %v1255_v49 = vadd.f32 %v437_v56, %v232_v55  ;;  %v962_v55 = vld [vmem:[%s1339_s1 + $0x70] sm:$0xff]  ;;  %v963_v56 = vld [vmem:[%s1339_s1 + $0x78] sm:$0xff] }
 0x28a   :  { %505 = vmatpush.msrb.mxu1 %v1250_v57  ;;  %948 = vmatmul.msk.f32.vlgmr.msrb.gmra.mxu0 %vm37_vm2, %v942_v54 }
 0x28b   :  { %952 = vmatmul.msk.f32.vlgmr.msrb.gmra.mxu1 %vm37_vm2, %v942_v54  ;;  %v961_v54 = vld [vmem:[%s1339_s1 + $0x68] sm:$0xff]  ;;  %s1112_s1 = smov [#allocation2]  }
 0x28c   :  { %s899_s9 = sshll.u32 %s1112_s1, 4  ;;  %s900_s9 = int_to_ptr.vmem [resolvable:$true] %s899_s9 }
 0x292   :  { %949 = vmatmul.msk.f32.gmra.mxu0 %vm37_vm2, %v943_v51 }
 0x293   :  { %953 = vmatmul.msk.f32.gmra.mxu1 %vm37_vm2, %v943_v51 }
 0x29a   :  { %950 = vmatmul.msk.f32.gmra.mxu0 %vm37_vm2, %v944_v59 }
 0x29b   :  { %954 = vmatmul.msk.f32.gmra.mxu1 %vm37_vm2, %v944_v59 }
 0x2a2   :  { %951 = vmatmul.msk.f32.gmra.mxu0 %vm37_vm2, %v945_v60 }
 0x2a3   :  { %955 = vmatmul.msk.f32.gmra.mxu1 %vm37_vm2, %v945_v60 }
 0x307   :  { %v478_v61 = vpop.f32.mrf.mxu0 }
 0x308   :  { %v507_v62 = vpop.f32.mrf.mxu1 }
 0x30f   :  { %v481_v1 = vpop.f32.mrf.mxu0 }
 0x310   :  { %v510_v2 = vpop.f32.mrf.mxu1 }
 0x317   :  { %v484_v4 = vpop.f32.mrf.mxu0 }
 0x318   :  { %v513_v5 = vpop.f32.mrf.mxu1 }
 0x31f   :  { %v487_v6 = vpop.f32.mrf.mxu0 }
 0x320   :  { %1033 = vtanh.f32 %v487_v6  ;;  %v516_v7 = vpop.f32.mrf.mxu1 }
 0x321   :  { %1035 = vtanh.f32 %v516_v7 }
 0x322   :  { %1037 = vtanh.f32 %v484_v4 }
 0x323   :  { %1039 = vtanh.f32 %v513_v5 }
 0x324   :  { %1041 = vtanh.f32 %v481_v1 }
 0x325   :  { %1043 = vtanh.f32 %v510_v2 }
 0x326   :  { %v1034_v8 = vpop.eup %1033  ;;  %1045 = vtanh.f32 %v478_v61 }
 0x327   :  { %v1036_v9 = vpop.eup %1035  ;;  %1047 = vtanh.f32 %v507_v62  ;;  %546 = vmatpush.msrb.mxu2 %v1034_v8 }
 0x328   :  { %v1038_v10 = vpop.eup %1037  ;;  %566 = vmatpush.msrb.mxu3 %v1036_v9 }
 0x329   :  { %v1040_v11 = vpop.eup %1039  ;;  %547 = vmatpush.msrb.mxu2 %v1038_v10 }
 0x32a   :  { %v1042_v12 = vpop.eup %1041  ;;  %567 = vmatpush.msrb.mxu3 %v1040_v11 }
 0x32b   :  { %v1044_v13 = vpop.eup %1043  ;;  %548 = vmatpush.msrb.mxu2 %v1042_v12 }
 0x32c   :  { %v1046_v14 = vpop.eup %1045  ;;  %568 = vmatpush.msrb.mxu3 %v1044_v13 }
 0x32d   :  { %v1048_v15 = vpop.eup %1047  ;;  %549 = vmatpush.msrb.mxu2 %v1046_v14 }
 0x32e   :  { %569 = vmatpush.msrb.mxu3 %v1048_v15  ;;  %956 = vmatmul.msk.f32.vlgmr.msrb.gmra.mxu2 %vm121_vm3, %v946_v0 }
 0x32f   :  { %957 = vmatmul.msk.f32.vlgmr.msrb.gmra.mxu3 %vm121_vm3, %v946_v0  ;;  %595 = vmatpush.msra.mxu2 %v1034_v8  ;;  %v735_v8 = vpop.permute.xlu0 %734 }
 0x330   :  { %615 = vmatpush.msra.mxu3 %v1036_v9 }
 0x331   :  { %596 = vmatpush.msra.mxu2 %v1038_v10 }
 0x332   :  { %616 = vmatpush.msra.mxu3 %v1040_v11 }
 0x333   :  { %597 = vmatpush.msra.mxu2 %v1042_v12 }
 0x334   :  { %617 = vmatpush.msra.mxu3 %v1044_v13 }
 0x335   :  { %598 = vmatpush.msra.mxu2 %v1046_v14 }
 0x336   :  { %618 = vmatpush.msra.mxu3 %v1048_v15  ;;  %958 = vmatmul.msk.f32.vlgmr.msra.gmra.mxu2 %vm121_vm3, %v947_v3 }
 0x337   :  { %959 = vmatmul.msk.f32.vlgmr.msra.gmra.mxu3 %vm121_vm3, %v947_v3 }
 0x3b1   :  { %v551_v17 = vpop.f32.mrf.mxu2 }
 0x3b2   :  { %v552_v19 = vadd.f32 %v551_v17, %v530_v16  ;;  %v571_v20 = vpop.f32.mrf.mxu3 }
 0x3b3   :  { %v572_v21 = vadd.f32 %v571_v20, %v530_v16 }
 0x3b4   :  { %1049 = vtanh.f32 %v552_v19 }
 0x3b5   :  { %1051 = vtanh.f32 %v572_v21 }
 0x3b9   :  { %v600_v32 = vpop.f32.mrf.mxu2 }
 0x3ba   :  { %v1050_v22 = vpop.eup %1049  ;;  %v620_v34 = vpop.f32.mrf.mxu3  ;;  %v601_v40 = vadd.f32 %v600_v32, %v579_v35 }
 0x3bb   :  { %v1052_v23 = vpop.eup %1051  ;;  %v631_v24 = vrot.slane %v1050_v22, 4  ;;  %v623_v25 = vmul.f32 1.442695, %v1050_v22  ;;  %v621_v43 = vadd.f32 %v620_v34, %v579_v35 }
 0x3bc   :  { %v637_v26 = vrot.slane %v1052_v23, 4  ;;  %v625_v27 = vmul.f32 1.442695, %v1052_v23 }
 0x3bd   :  { %v632_v28 = vadd.f32 %v1050_v22, %v631_v24  ;;  %1053 = vpow2.f32 %v623_v25  ;;  %v784_v25 = vpop.permute.xlu1 %783 }
 0x3be   :  { %v638_v29 = vadd.f32 %v1052_v23, %v637_v26  ;;  %1055 = vpow2.f32 %v625_v27 }
 0x3bf   :  { %v633_v30 = vrot.slane %v632_v28, 2 }
 0x3c0   :  { %v639_v31 = vrot.slane %v638_v29, 2 }
 0x3c1   :  { %v634_v33 = vadd.f32 %v633_v30, %v632_v28 }
 0x3c2   :  { %v640_v36 = vadd.f32 %v639_v31, %v638_v29 }
 0x3c3   :  { %v1054_v37 = vpop.eup %1053  ;;  %v635_v38 = vrot.slane %v634_v33, 1 }
 0x3c4   :  { %v1056_v39 = vpop.eup %1055  ;;  %v627_v41 = vmul.f32 %v1054_v37, %v1245_v53  ;;  %v641_v42 = vrot.slane %v640_v36, 1 }
 0x3c5   :  { %v628_v44 = vmul.f32 %v1056_v39, %v1250_v57  ;;  %v636_v45 = vadd.f32 %v635_v38, %v634_v33 }
 0x3c6   :  { %v1287_v46 = vadd.f32 %v627_v41, %v601_v40  ;;  %v642_v48 = vadd.f32 %v641_v42, %v640_v36 }
 0x3c7   :  { %v1292_v50 = vadd.f32 %v628_v44, %v621_v43  ;;  %v1295_v52 = vadd.f32 %v636_v45, %v1252_v58 }
 0x3c8   :  { %681 = vmatpush.msrb.mxu2 %v1287_v46  ;;  %v1299_v53 = vadd.f32 %v642_v48, %v1255_v49 }
 0x3c9   :  { %710 = vmatpush.msrb.mxu3 %v1292_v50  ;;  %966 = vmatmul.msk.f32.vlgmr.msrb.gmra.mxu2 %vm37_vm2, %v960_v47 }
 0x3ca   :  { %970 = vmatmul.msk.f32.vlgmr.msrb.gmra.mxu3 %vm37_vm2, %v960_v47 }
 0x3d1   :  { %967 = vmatmul.msk.f32.gmra.mxu2 %vm37_vm2, %v961_v54 }
 0x3d2   :  { %971 = vmatmul.msk.f32.gmra.mxu3 %vm37_vm2, %v961_v54 }
 0x3d9   :  { %968 = vmatmul.msk.f32.gmra.mxu2 %vm37_vm2, %v962_v55 }
 0x3da   :  { %972 = vmatmul.msk.f32.gmra.mxu3 %vm37_vm2, %v962_v55 }
 0x3e1   :  { %969 = vmatmul.msk.f32.gmra.mxu2 %vm37_vm2, %v963_v56 }
 0x3e2   :  { %973 = vmatmul.msk.f32.gmra.mxu3 %vm37_vm2, %v963_v56 }
 0x44c   :  { %v683_v57 = vpop.f32.mrf.mxu2 }
 0x44d   :  { %v712_v58 = vpop.f32.mrf.mxu3 }
 0x454   :  { %v686_v49 = vpop.f32.mrf.mxu2 }
 0x455   :  { %v715_v51 = vpop.f32.mrf.mxu3 }
 0x45c   :  { %v689_v59 = vpop.f32.mrf.mxu2 }
 0x45d   :  { %v718_v60 = vpop.f32.mrf.mxu3 }
 0x464   :  { %v692_v61 = vpop.f32.mrf.mxu2 }
 0x465   :  { %1057 = vtanh.f32 %v692_v61  ;;  %v721_v62 = vpop.f32.mrf.mxu3 }
 0x466   :  { %1059 = vtanh.f32 %v721_v62 }
 0x467   :  { %1061 = vtanh.f32 %v689_v59 }
 0x468   :  { %1063 = vtanh.f32 %v718_v60 }
 0x469   :  { %1065 = vtanh.f32 %v686_v49 }
 0x46a   :  { %1067 = vtanh.f32 %v715_v51 }
 0x46b   :  { %v1058_v0 = vpop.eup %1057  ;;  %1069 = vtanh.f32 %v683_v57 }
 0x46c   :  { %v1060_v1 = vpop.eup %1059  ;;  %1071 = vtanh.f32 %v712_v58  ;;  %751 = vmatpush.msra.mxu0 %v1058_v0 }
 0x46d   :  { %v1062_v2 = vpop.eup %1061  ;;  %771 = vmatpush.msra.mxu1 %v1060_v1 }
 0x46e   :  { %v1064_v3 = vpop.eup %1063  ;;  %752 = vmatpush.msra.mxu0 %v1062_v2 }
 0x46f   :  { %v1066_v4 = vpop.eup %1065  ;;  %772 = vmatpush.msra.mxu1 %v1064_v3 }
 0x470   :  { %v1068_v5 = vpop.eup %1067  ;;  %753 = vmatpush.msra.mxu0 %v1066_v4 }
 0x471   :  { %v1070_v6 = vpop.eup %1069  ;;  %773 = vmatpush.msra.mxu1 %v1068_v5 }
 0x472   :  { %v1072_v7 = vpop.eup %1071  ;;  %754 = vmatpush.msra.mxu0 %v1070_v6 }
 0x473   :  { %774 = vmatpush.msra.mxu1 %v1072_v7  ;;  %974 = vmatmul.msk.f32.vlgmr.msra.gmra.mxu0 %vm121_vm3, %v1180_v18 }
 0x474   :  { %975 = vmatmul.msk.f32.vlgmr.msra.gmra.mxu1 %vm121_vm3, %v1180_v18  ;;  %800 = vmatpush.msrb.mxu0 %v1058_v0 }
 0x475   :  { %820 = vmatpush.msrb.mxu1 %v1060_v1 }
 0x476   :  { %801 = vmatpush.msrb.mxu0 %v1062_v2 }
 0x477   :  { %821 = vmatpush.msrb.mxu1 %v1064_v3 }
 0x478   :  { %802 = vmatpush.msrb.mxu0 %v1066_v4 }
 0x479   :  { %822 = vmatpush.msrb.mxu1 %v1068_v5 }
 0x47a   :  { %803 = vmatpush.msrb.mxu0 %v1070_v6 }
 0x47b   :  { %823 = vmatpush.msrb.mxu1 %v1072_v7  ;;  %976 = vmatmul.msk.f32.vlgmr.msrb.gmra.mxu0 %vm121_vm3, %v1232_v63 }
 0x47c   :  { %977 = vmatmul.msk.f32.vlgmr.msrb.gmra.mxu1 %vm121_vm3, %v1232_v63 }
 0x4f0   :  { %v756_v9 = vpop.f32.mrf.mxu0 }
 0x4f1   :  { %v757_v10 = vadd.f32 %v756_v9, %v735_v8  ;;  %v776_v11 = vpop.f32.mrf.mxu1 }
 0x4f2   :  { %v777_v12 = vadd.f32 %v776_v11, %v735_v8 }
 0x4f3   :  { %1073 = vtanh.f32 %v757_v10 }
 0x4f4   :  { %1075 = vtanh.f32 %v777_v12 }
 0x4f8   :  { %v805_v22 = vpop.f32.mrf.mxu0 }
 0x4f9   :  { %v1074_v18 = vpop.eup %1073  ;;  %v825_v23 = vpop.f32.mrf.mxu1  ;;  %v806_v27 = vadd.f32 %v805_v22, %v784_v25 }
 0x4fa   :  { %v1076_v13 = vpop.eup %1075  ;;  %v836_v14 = vrot.slane %v1074_v18, 4  ;;  %v828_v15 = vmul.f32 1.442695, %v1074_v18  ;;  %v826_v30 = vadd.f32 %v825_v23, %v784_v25 }
 0x4fb   :  { %v842_v16 = vrot.slane %v1076_v13, 4  ;;  %v830_v17 = vmul.f32 1.442695, %v1076_v13 }
 0x4fc   :  { %v837_v19 = vadd.f32 %v1074_v18, %v836_v14  ;;  %1077 = vpow2.f32 %v828_v15 }
 0x4fd   :  { %v843_v20 = vadd.f32 %v1076_v13, %v842_v16  ;;  %1079 = vpow2.f32 %v830_v17 }
 0x4fe   :  { %v838_v21 = vrot.slane %v837_v19, 2 }
 0x4ff   :  { %v844_v63 = vrot.slane %v843_v20, 2 }
 0x500   :  { %v839_v29 = vadd.f32 %v838_v21, %v837_v19 }
 0x501   :  { %v845_v32 = vadd.f32 %v844_v63, %v843_v20 }
 0x502   :  { %v1078_v24 = vpop.eup %1077  ;;  %v840_v36 = vrot.slane %v839_v29, 1 }
 0x503   :  { %v1080_v26 = vpop.eup %1079  ;;  %v832_v28 = vmul.f32 %v1078_v24, %v1287_v46  ;;  %v846_v35 = vrot.slane %v845_v32, 1 }
 0x504   :  { %v833_v31 = vmul.f32 %v1080_v26, %v1292_v50  ;;  %v841_v41 = vadd.f32 %v840_v36, %v839_v29 }
 0x505   :  { %v834_v33 = vadd.f32 %v832_v28, %v806_v27  ;;  %v847_v43 = vadd.f32 %v846_v35, %v845_v32 }
 0x506   :  { %v835_v34 = vadd.f32 %v833_v31, %v826_v30  ;;  %v848_v46 = vadd.f32 %v841_v41, %v1295_v52 }
 0x507   :  { %v850_v37 = vmul.f32 %v834_v33, %v834_v33  ;;  %v849_v50 = vadd.f32 %v847_v43, %v1299_v53 }
 0x508   :  { %v851_v38 = vmul.f32 %v835_v34, %v835_v34 }
 0x509   :  { %v854_v39 = vrot.slane %v850_v37, 1 }
 0x50a   :  { %v855_v40 = vrot.slane %v851_v38, 1 }
 0x50b   :  { %v858_v42 = vadd.f32 %v854_v39, %v850_v37 }
 0x50c   :  { %v859_v44 = vadd.f32 %v855_v40, %v851_v38 }
 0x50d   :  { %v860_v45 = vmul.f32 -0.5, %v858_v42 }
 0x50e   :  { %v861_v47 = vmul.f32 -0.5, %v859_v44 }
 0x50f   :  { %v978_v48 = vadd.f32 -1.837877, %v860_v45 }
 0x510   :  { %v979_v54 = vadd.f32 -1.837877, %v861_v47 }
 0x511   :  { %v864_v55 = vadd.f32 %v978_v48, %v848_v46  ;;  %v872_v49 = vrot.slane %v978_v48, 5 }
 0x512   :  { %v865_v56 = vadd.f32 %v979_v54, %v849_v50  ;;  %v873_v51 = vrot.slane %v979_v54, 5 }
 0x513   :  { %v866_v57 = vmul.f32 1.442695, %v864_v55  ;;  %v882_v59 = vsel %vm25_vm0, %v834_v33, %v872_v49 }
 0x514   :  { %v868_v58 = vmul.f32 1.442695, %v865_v56  ;;  %v883_v61 = vsel %vm25_vm0, %v835_v34, %v873_v51  ;;  %v884_v0 = vsel %vm28_vm1, %v882_v59, %v848_v46 }
 0x515   :  { %1081 = vpow2.f32 %v866_v57  ;;  %v885_v1 = vsel %vm28_vm1, %v883_v61, %v849_v50 }
 0x516   :  { %1083 = vpow2.f32 %v868_v58 }
 0x51b   :  { %v1082_v60 = vpop.eup %1081 }
 0x51c   :  { %v1084_v62 = vpop.eup %1083  ;;  %v878_v52 = vrot.slane %v1082_v60, 3 }
 0x51d   :  { %v879_v53 = vrot.slane %v1084_v62, 3 }
 0x51e   :  { %v887_v2 = vsel %vm886_vm4, %v884_v0, %v878_v52 }
 0x51f   :  { %v888_v3 = vsel %vm886_vm4, %v885_v1, %v879_v53  ;;  %v890_v4 = vsel %vm889_vm5, %v887_v2, 0.0 }
 0x520   :  { %v891_v5 = vsel %vm889_vm5, %v888_v3, 0.0  ;;  %892 = vst [vmem:[#allocation2] sm:$0xff] %v890_v4 }
 0x521   :  { %893 = vst [vmem:[#allocation2 + $0x8] sm:$0xff] %v891_v5 }
 0x522   :  { %904 = dma.vmem_to_hbm [thread:$0]  %s900_s9, 256, %s902_s12, [#allocation3]  }
 0x523   :  { %1109 = dma.done.wait [#allocation3], 256  }
 0x524   :  { %1110 = vsyncadd [#allocation3], 4294967040 }
 0x525   :  { %909 = vsyncpa [#allocation3], 1 }

</bundles_post_ra>
